<compile_context>
chip_gen: v7x
topology: tpu7x:2x2x1
jax: 0.10.0
libtpu: 0.0.40
codegen_flags: <defaults>
</compile_context>

<pallas_src>
import functools

import jax
import jax.numpy as jnp
from jax.experimental import pallas as pl
from jax.experimental.pallas import tpu as pltpu


# ----------------------------------------------------------------------------
# Activations (applied in f32 inside the kernel)
# ----------------------------------------------------------------------------
# TODO(synk): PReLU in the reference has a learnable slope; we use its default
# init value (0.25) as a constant.
ACTIVATIONS = {
    "relu": lambda y: jnp.maximum(y, 0.0),
    "sigmoid": jax.nn.sigmoid,
    "swish": lambda y: y * jax.nn.sigmoid(y),
    "tanh": jnp.tanh,
    "lrelu": lambda y: jnp.where(y > 0, y, 0.01 * y),
    "Elu": lambda y: jnp.where(y > 0, y, jnp.expm1(y)),
    "PReLU": lambda y: jnp.where(y > 0, y, 0.25 * y),
}


# ----------------------------------------------------------------------------
# Fused Pallas kernel
# ----------------------------------------------------------------------------
def make_fused_kernel(n_enc, n_dec, latent_dim, activation):
    """Builds the fused forward kernel for a given architecture.

    Weight operands (in order): fc1, encoder[0..n_enc), mu||sig (concat along
    dout), decoder[0..n_dec), fc_end.  Each as (w_bf16, b_f32) pair.
    """
    act_fn = ACTIVATIONS[activation]
    n_mats = 3 + n_enc + n_dec  # fc1 + encoders + musig + decoders + fc_end

    def kernel(*refs):
        x_ref, eps_ref = refs[0], refs[1]
        w_refs = refs[2:2 + 2 * n_mats]
        recon_ref = refs[2 + 2 * n_mats]
        musig_ref = refs[3 + 2 * n_mats]

        def affine(h, j):
            # bf16 MXU matmul with f32 accumulation; bias add in f32.
            w = w_refs[2 * j][...]            # bf16 (din, dout)
            b = w_refs[2 * j + 1][...]        # f32  (1, dout)
            y = jnp.dot(h.astype(jnp.bfloat16), w,
                        preferred_element_type=jnp.float32)
            return y + b

        # ---- encode -------------------------------------------------------
        h = x_ref[...]                        # (B, 784) f32
        h = affine(h, 0)                      # fc1 (no activation, as in ref)
        for i in range(n_enc):
            h = act_fn(affine(h, 1 + i))      # Linear + activation

        # fused mu / log_var heads: one matmul producing (B, 2*latent)
        musig = affine(h, 1 + n_enc)
        musig_ref[...] = musig.astype(musig_ref.dtype)
        mu = musig[:, :latent_dim]
        log_var = musig[:, latent_dim:]

        # ---- reparameterize (f32, EUP exp + VPU mul/add) --------------------
        z = mu + eps_ref[...] * jnp.exp(0.5 * log_var)

        # ---- decode ---------------------------------------------------------
        h = z
        for i in range(n_dec):
            h = act_fn(affine(h, 2 + n_enc + i))
        recon_ref[...] = affine(h, 2 + n_enc + n_dec).astype(recon_ref.dtype)

    return kernel


def _full_vmem_spec(arr):
    nd = arr.ndim
    return pl.BlockSpec(arr.shape, lambda *_, nd=nd: (0,) * nd,
                        memory_space=pltpu.VMEM)


# ----------------------------------------------------------------------------
# Parameter construction + fused forward wrapper
# ----------------------------------------------------------------------------
def init_linear(key, din, dout):
    kw, kb = jax.random.split(key)
    scale = 1.0 / jnp.sqrt(jnp.float32(din))
    w = jax.random.uniform(kw, (din, dout), jnp.float32, -scale, scale)
    b = jax.random.uniform(kb, (dout,), jnp.float32, -scale, scale)
    return w, b


def init_beta_vae(key, layers):
    """Mirror of BetaVAE.__init__ parameter shapes (weights stored (in, out))."""
    L = len(layers)
    half = L // 2
    params = {}
    keys = iter(jax.random.split(key, 3 + L))

    params["fc1"] = init_linear(next(keys), 784, layers[0])
    params["encoder"] = [
        init_linear(next(keys), layers[i - 1], layers[i]) for i in range(1, half)
    ]
    params["mu"] = init_linear(next(keys), layers[half - 1], layers[half])
    params["sig"] = init_linear(next(keys), layers[half - 1], layers[half])
    params["decoder"] = [
        init_linear(next(keys), layers[i - 1], layers[i]) for i in range(half + 1, L)
    ]
    params["fc_end"] = init_linear(next(keys), layers[-1], 784)
    return params


@functools.partial(jax.jit, static_argnames=("activation",))
def beta_vae_forward(params, x, eps, activation="relu"):
    B = x.shape[0]
    xf = x.reshape(B, 784).astype(jnp.float32)   # x.view(-1, 784)
    latent = params["mu"][0].shape[1]

    # Flat operand list: weights as bf16 (halves DMA bytes, native MXU dtype),
    # biases as f32 rows.
    mats = []

    def add(w, b):
        mats.append(w.astype(jnp.bfloat16))
        mats.append(b.reshape(1, -1).astype(jnp.float32))

    add(*params["fc1"])
    for wb in params["encoder"]:
        add(*wb)
    w_mu, b_mu = params["mu"]
    w_sig, b_sig = params["sig"]
    add(jnp.concatenate([w_mu, w_sig], axis=1),
        jnp.concatenate([b_mu, b_sig], axis=0))
    for wb in params["decoder"]:
        add(*wb)
    add(*params["fc_end"])

    n_enc = len(params["encoder"])
    n_dec = len(params["decoder"])
    kernel = make_fused_kernel(n_enc, n_dec, latent, activation)

    operands = [xf, eps] + mats
    recon, musig = pl.pallas_call(
        kernel,
        out_shape=(
            jax.ShapeDtypeStruct((B, 784), jnp.float32),
            jax.ShapeDtypeStruct((B, 2 * latent), jnp.float32),
        ),
        in_specs=[_full_vmem_spec(a) for a in operands],
        out_specs=(
            pl.BlockSpec((B, 784), lambda *_: (0, 0), memory_space=pltpu.VMEM),
            pl.BlockSpec((B, 2 * latent), lambda *_: (0, 0),
                         memory_space=pltpu.VMEM),
        ),
    )(*operands)

    mu = musig[:, :latent]
    log_var = musig[:, latent:]
    return recon, mu, log_var


# ----------------------------------------------------------------------------
# Main
# ----------------------------------------------------------------------------
if __name__ == "__main__":
    key = jax.random.PRNGKey(0)
    k_param, k_input, k_eps = jax.random.split(key, 3)

    # layers = [256, 128, 32, 128, 256]:
    #   fc1: 784->256, encoder: 256->128 (+relu),
    #   mu/sig: 128->32, decoder: 32->128, 128->256 (+relu), fc_end: 256->784
    layers = [256, 128, 32, 128, 256]
    params = init_beta_vae(k_param, layers)

    # NCHW-style image input, flattened inside forward (like x.view(-1, 784)).
    batch = 8
    x = jax.random.normal(k_input, (batch, 1, 28, 28), jnp.float32)

    latent = layers[len(layers) // 2]
    # eps stands in for torch.randn_like(std) (generated outside the kernel).
    eps = jax.random.normal(k_eps, (batch, latent), jnp.float32)

    recon, mu, log_var = beta_vae_forward(params, x, eps, activation="relu")
    jax.block_until_ready((recon, mu, log_var))

    assert recon.shape == (batch, 784)
    assert mu.shape == (batch, latent)
    assert log_var.shape == (batch, latent)
    assert jnp.all(jnp.isfinite(recon))
    assert jnp.all(jnp.isfinite(mu))
    assert jnp.all(jnp.isfinite(log_var))

    print("KERNEL_OK")
</pallas_src>

<mosaic_0001>
module attributes {stable_mosaic.version = 11 : i64} {
  func.func @kernel(%arg0: memref<8x784xf32, #tpu.memory_space<vmem>>, %arg1: memref<8x32xf32, #tpu.memory_space<vmem>>, %arg2: memref<784x256xbf16, #tpu.memory_space<vmem>>, %arg3: memref<1x256xf32, #tpu.memory_space<vmem>>, %arg4: memref<256x128xbf16, #tpu.memory_space<vmem>>, %arg5: memref<1x128xf32, #tpu.memory_space<vmem>>, %arg6: memref<128x64xbf16, #tpu.memory_space<vmem>>, %arg7: memref<1x64xf32, #tpu.memory_space<vmem>>, %arg8: memref<32x128xbf16, #tpu.memory_space<vmem>>, %arg9: memref<1x128xf32, #tpu.memory_space<vmem>>, %arg10: memref<128x256xbf16, #tpu.memory_space<vmem>>, %arg11: memref<1x256xf32, #tpu.memory_space<vmem>>, %arg12: memref<256x784xbf16, #tpu.memory_space<vmem>>, %arg13: memref<1x784xf32, #tpu.memory_space<vmem>>, %arg14: memref<8x784xf32, #tpu.memory_space<vmem>>, %arg15: memref<8x64xf32, #tpu.memory_space<vmem>>) attributes {dimension_semantics = [], scalar_prefetch = 0 : i64, scratch_operands = 0 : i64, tpu.core_type = #tpu.core_type<tc>} {
    %c0 = arith.constant 0 : index
    %c0_0 = arith.constant 0 : index
    %0 = vector.load %arg0[%c0, %c0_0] : memref<8x784xf32, #tpu.memory_space<vmem>>, vector<8x784xf32>
    %c0_1 = arith.constant 0 : index
    %c0_2 = arith.constant 0 : index
    %1 = vector.load %arg2[%c0_1, %c0_2] : memref<784x256xbf16, #tpu.memory_space<vmem>>, vector<784x256xbf16>
    %c0_3 = arith.constant 0 : index
    %c0_4 = arith.constant 0 : index
    %2 = vector.load %arg3[%c0_3, %c0_4] : memref<1x256xf32, #tpu.memory_space<vmem>>, vector<1x256xf32>
    %3 = arith.truncf %0 : vector<8x784xf32> to vector<8x784xbf16>
    %cst = arith.constant dense<0.000000e+00> : vector<8x256xf32>
    %4 = tpu.matmul %3, %1, %cst {dimension_numbers = #tpu.dot_dimension_numbers<[1], [0], [0], [1], [0, 0, 1, 1], [], []>} : vector<8x784xbf16>, vector<784x256xbf16>, vector<8x256xf32> -> vector<8x256xf32>
    %5 = vector.broadcast %2 : vector<1x256xf32> to vector<8x256xf32>
    %6 = arith.addf %4, %5 : vector<8x256xf32>
    %c0_5 = arith.constant 0 : index
    %c0_6 = arith.constant 0 : index
    %7 = vector.load %arg4[%c0_5, %c0_6] : memref<256x128xbf16, #tpu.memory_space<vmem>>, vector<256x128xbf16>
    %c0_7 = arith.constant 0 : index
    %c0_8 = arith.constant 0 : index
    %8 = vector.load %arg5[%c0_7, %c0_8] : memref<1x128xf32, #tpu.memory_space<vmem>>, vector<1x128xf32>
    %9 = arith.truncf %6 : vector<8x256xf32> to vector<8x256xbf16>
    %cst_9 = arith.constant dense<0.000000e+00> : vector<8x128xf32>
    %10 = tpu.matmul %9, %7, %cst_9 {dimension_numbers = #tpu.dot_dimension_numbers<[1], [0], [0], [1], [0, 0, 1, 1], [], []>} : vector<8x256xbf16>, vector<256x128xbf16>, vector<8x128xf32> -> vector<8x128xf32>
    %11 = vector.broadcast %8 : vector<1x128xf32> to vector<8x128xf32>
    %12 = arith.addf %10, %11 : vector<8x128xf32>
    %cst_10 = arith.constant 0.000000e+00 : f32
    %13 = vector.broadcast %cst_10 : f32 to vector<8x128xf32>
    %14 = arith.maximumf %12, %13 : vector<8x128xf32>
    %c0_11 = arith.constant 0 : index
    %c0_12 = arith.constant 0 : index
    %15 = vector.load %arg6[%c0_11, %c0_12] : memref<128x64xbf16, #tpu.memory_space<vmem>>, vector<128x64xbf16>
    %c0_13 = arith.constant 0 : index
    %c0_14 = arith.constant 0 : index
    %16 = vector.load %arg7[%c0_13, %c0_14] : memref<1x64xf32, #tpu.memory_space<vmem>>, vector<1x64xf32>
    %17 = arith.truncf %14 : vector<8x128xf32> to vector<8x128xbf16>
    %cst_15 = arith.constant dense<0.000000e+00> : vector<8x64xf32>
    %18 = tpu.matmul %17, %15, %cst_15 {dimension_numbers = #tpu.dot_dimension_numbers<[1], [0], [0], [1], [0, 0, 1, 1], [], []>} : vector<8x128xbf16>, vector<128x64xbf16>, vector<8x64xf32> -> vector<8x64xf32>
    %19 = vector.broadcast %16 : vector<1x64xf32> to vector<8x64xf32>
    %20 = arith.addf %18, %19 : vector<8x64xf32>
    %c0_16 = arith.constant 0 : index
    %c0_17 = arith.constant 0 : index
    %21 = vector.load %arg15[%c0_16, %c0_17] : memref<8x64xf32, #tpu.memory_space<vmem>>, vector<8x64xf32>
    tpu.vector_store %arg15[%c0_16, %c0_17], %20 {strides = array<i32>} : memref<8x64xf32, #tpu.memory_space<vmem>>, vector<8x64xf32>,
    %22 = vector.extract_strided_slice %20 {offsets = [0, 0], sizes = [8, 32], strides = [1, 1]} : vector<8x64xf32> to vector<8x32xf32>
    %23 = vector.extract_strided_slice %20 {offsets = [0, 32], sizes = [8, 32], strides = [1, 1]} : vector<8x64xf32> to vector<8x32xf32>
    %c0_18 = arith.constant 0 : index
    %c0_19 = arith.constant 0 : index
    %24 = vector.load %arg1[%c0_18, %c0_19] : memref<8x32xf32, #tpu.memory_space<vmem>>, vector<8x32xf32>
    %cst_20 = arith.constant 5.000000e-01 : f32
    %25 = vector.broadcast %cst_20 : f32 to vector<8x32xf32>
    %26 = arith.mulf %25, %23 : vector<8x32xf32>
    %27 = math.exp %26 : vector<8x32xf32>
    %28 = arith.mulf %24, %27 : vector<8x32xf32>
    %29 = arith.addf %22, %28 : vector<8x32xf32>
    %c0_21 = arith.constant 0 : index
    %c0_22 = arith.constant 0 : index
    %30 = vector.load %arg8[%c0_21, %c0_22] : memref<32x128xbf16, #tpu.memory_space<vmem>>, vector<32x128xbf16>
    %c0_23 = arith.constant 0 : index
    %c0_24 = arith.constant 0 : index
    %31 = vector.load %arg9[%c0_23, %c0_24] : memref<1x128xf32, #tpu.memory_space<vmem>>, vector<1x128xf32>
    %32 = arith.truncf %29 : vector<8x32xf32> to vector<8x32xbf16>
    %cst_25 = arith.constant dense<0.000000e+00> : vector<8x128xf32>
    %33 = tpu.matmul %32, %30, %cst_25 {dimension_numbers = #tpu.dot_dimension_numbers<[1], [0], [0], [1], [0, 0, 1, 1], [], []>} : vector<8x32xbf16>, vector<32x128xbf16>, vector<8x128xf32> -> vector<8x128xf32>
    %34 = vector.broadcast %31 : vector<1x128xf32> to vector<8x128xf32>
    %35 = arith.addf %33, %34 : vector<8x128xf32>
    %cst_26 = arith.constant 0.000000e+00 : f32
    %36 = vector.broadcast %cst_26 : f32 to vector<8x128xf32>
    %37 = arith.maximumf %35, %36 : vector<8x128xf32>
    %c0_27 = arith.constant 0 : index
    %c0_28 = arith.constant 0 : index
    %38 = vector.load %arg10[%c0_27, %c0_28] : memref<128x256xbf16, #tpu.memory_space<vmem>>, vector<128x256xbf16>
    %c0_29 = arith.constant 0 : index
    %c0_30 = arith.constant 0 : index
    %39 = vector.load %arg11[%c0_29, %c0_30] : memref<1x256xf32, #tpu.memory_space<vmem>>, vector<1x256xf32>
    %40 = arith.truncf %37 : vector<8x128xf32> to vector<8x128xbf16>
    %cst_31 = arith.constant dense<0.000000e+00> : vector<8x256xf32>
    %41 = tpu.matmul %40, %38, %cst_31 {dimension_numbers = #tpu.dot_dimension_numbers<[1], [0], [0], [1], [0, 0, 1, 1], [], []>} : vector<8x128xbf16>, vector<128x256xbf16>, vector<8x256xf32> -> vector<8x256xf32>
    %42 = vector.broadcast %39 : vector<1x256xf32> to vector<8x256xf32>
    %43 = arith.addf %41, %42 : vector<8x256xf32>
    %cst_32 = arith.constant 0.000000e+00 : f32
    %44 = vector.broadcast %cst_32 : f32 to vector<8x256xf32>
    %45 = arith.maximumf %43, %44 : vector<8x256xf32>
    %c0_33 = arith.constant 0 : index
    %c0_34 = arith.constant 0 : index
    %46 = vector.load %arg12[%c0_33, %c0_34] : memref<256x784xbf16, #tpu.memory_space<vmem>>, vector<256x784xbf16>
    %c0_35 = arith.constant 0 : index
    %c0_36 = arith.constant 0 : index
    %47 = vector.load %arg13[%c0_35, %c0_36] : memref<1x784xf32, #tpu.memory_space<vmem>>, vector<1x784xf32>
    %48 = arith.truncf %45 : vector<8x256xf32> to vector<8x256xbf16>
    %cst_37 = arith.constant dense<0.000000e+00> : vector<8x784xf32>
    %49 = tpu.matmul %48, %46, %cst_37 {dimension_numbers = #tpu.dot_dimension_numbers<[1], [0], [0], [1], [0, 0, 1, 1], [], []>} : vector<8x256xbf16>, vector<256x784xbf16>, vector<8x784xf32> -> vector<8x784xf32>
    %50 = vector.broadcast %47 : vector<1x784xf32> to vector<8x784xf32>
    %51 = arith.addf %49, %50 : vector<8x784xf32>
    %c0_38 = arith.constant 0 : index
    %c0_39 = arith.constant 0 : index
    %52 = vector.load %arg14[%c0_38, %c0_39] : memref<8x784xf32, #tpu.memory_space<vmem>>, vector<8x784xf32>
    tpu.vector_store %arg14[%c0_38, %c0_39], %51 {strides = array<i32>} : memref<8x784xf32, #tpu.memory_space<vmem>>, vector<8x784xf32>,
    return
  }
}

</mosaic_0001>

<bundles_post_ra>
// kernel: beta_vae_forward.1
= control target key start
LH: loop header
LB: loop body
LE: loop exit
PB: predicated region body
PF: predicated region fallthrough
CT: control target
= control target key end

     0   :  { %s3975_s0 = inlined_call_operand.vmem [shape: f32[8,784], index: 0, kind: input, shape index: {}]   ;;  %s3976_s1 = inlined_call_operand.vmem [shape: f32[8,32], index: 1, kind: input, shape index: {}]   ;;  %s3977_s2 = inlined_call_operand.vmem [shape: bf16[784,256], index: 2, kind: input, shape index: {}]   ;;  %s3978_s3 = inlined_call_operand.vmem [shape: f32[1,256], index: 3, kind: input, shape index: {}]   ;;  %s3979_s4 = inlined_call_operand.vmem [shape: bf16[256,128], index: 4, kind: input, shape index: {}]   ;;  %s3980_s5 = inlined_call_operand.vmem [shape: f32[1,128], index: 5, kind: input, shape index: {}]   ;;  %s3981_s6 = inlined_call_operand.vmem [shape: bf16[128,64], index: 6, kind: input, shape index: {}]   ;;  %s3982_s7 = inlined_call_operand.vmem [shape: f32[1,64], index: 7, kind: input, shape index: {}]   ;;  %s3983_s8 = inlined_call_operand.vmem [shape: bf16[32,128], index: 8, kind: input, shape index: {}]   ;;  %s3984_s9 = inlined_call_operand.vmem [shape: f32[1,128], index: 9, kind: input, shape index: {}]   ;;  %s3985_s10 = inlined_call_operand.vmem [shape: bf16[128,256], index: 10, kind: input, shape index: {}]   ;;  %s3986_s11 = inlined_call_operand.vmem [shape: f32[1,256], index: 11, kind: input, shape index: {}]   ;;  %s3987_s12 = inlined_call_operand.vmem [shape: bf16[256,784], index: 12, kind: input, shape index: {}]   ;;  %s3988_s13 = inlined_call_operand.vmem [shape: f32[1,784], index: 13, kind: input, shape index: {}]   ;;  %s3989_s14 = inlined_call_operand.hbm [shape: f32[8,784], index: 14, kind: output, shape index: {0}]   ;;  %s3990_s15 = inlined_call_operand.vmem [shape: f32[8,64], index: 15, kind: output, shape index: {1}]  }
   0x1   :  { %v2647_v0 = vld [vmem:[%s3977_s2 + $0x4] ss:$8 sps:$4 sm:$0xff]   ;;  %v2649_v1 = vld [vmem:[%s3977_s2] ss:$8 sps:$4 sm:$0xff]   ;;  %v2650_v2 = vld [vmem:[%s3977_s2 + $0x14] ss:$8 sps:$4 sm:$0xff]  }
   0x2   :  { %669 = vmatprep.subr.bf16.mxu0 %v2647_v0  ;;  %v2652_v3 = vld [vmem:[%s3977_s2 + $0x10] ss:$8 sps:$4 sm:$0xff]   ;;  %v2653_v4 = vld [vmem:[%s3977_s2 + $0x24] ss:$8 sps:$4 sm:$0xff]   ;;  %v2655_v5 = vld [vmem:[%s3977_s2 + $0x20] ss:$8 sps:$4 sm:$0xff]  }
   0x3   :  { %670 = vmatpush1.bf16.msra.mxu0 %v2649_v1  ;;  %v2656_v6 = vld [vmem:[%s3977_s2 + $0x34] ss:$8 sps:$4 sm:$0xff]   ;;  %v2658_v7 = vld [vmem:[%s3977_s2 + $0x30] ss:$8 sps:$4 sm:$0xff]   ;;  %v2659_v8 = vld [vmem:[%s3977_s2 + $0x44] ss:$8 sps:$4 sm:$0xff]  }
   0x4   :  { %671 = vmatprep.subr.bf16.mxu0 %v2650_v2  ;;  %v2661_v9 = vld [vmem:[%s3977_s2 + $0x40] ss:$8 sps:$4 sm:$0xff]   ;;  %v2662_v10 = vld [vmem:[%s3977_s2 + $0x54] ss:$8 sps:$4 sm:$0xff]   ;;  %v2664_v11 = vld [vmem:[%s3977_s2 + $0x50] ss:$8 sps:$4 sm:$0xff]  }
   0x5   :  { %v2665_v12 = vld [vmem:[%s3977_s2 + $0x64] ss:$8 sps:$4 sm:$0xff]   ;;  %v2667_v15 = vld [vmem:[%s3977_s2 + $0x60] ss:$8 sps:$4 sm:$0xff]   ;;  %v2668_v16 = vld [vmem:[%s3977_s2 + $0x74] ss:$8 sps:$4 sm:$0xff]  }
   0x6   :  { %v52_v13 = vld [vmem:[%s3975_s0 + $0x8] sm:$0xff]  ;;  %v2670_v17 = vld [vmem:[%s3977_s2 + $0x70] ss:$8 sps:$4 sm:$0xff]   ;;  %v2674_v20 = vld [vmem:[%s3977_s2 + $0x94] ss:$8 sps:$4 sm:$0xff]  }
   0x7   :  { %672 = vmatpush1.bf16.msra.mxu0 %v2652_v3  ;;  %v158_v14 = vpack.c.bf16 %v52_v13, %v52_v13  ;;  %v2671_v18 = vld [vmem:[%s3977_s2 + $0x84] ss:$8 sps:$4 sm:$0xff]   ;;  %v2673_v19 = vld [vmem:[%s3977_s2 + $0x80] ss:$8 sps:$4 sm:$0xff]   ;;  %v2676_v21 = vld [vmem:[%s3977_s2 + $0x90] ss:$8 sps:$4 sm:$0xff]  }
   0x8   :  { %673 = vmatprep.subr.bf16.mxu0 %v2653_v4  ;;  %v2677_v22 = vld [vmem:[%s3977_s2 + $0xa4] ss:$8 sps:$4 sm:$0xff]   ;;  %v2679_v23 = vld [vmem:[%s3977_s2 + $0xa0] ss:$8 sps:$4 sm:$0xff]   ;;  %v2680_v24 = vld [vmem:[%s3977_s2 + $0xb4] ss:$8 sps:$4 sm:$0xff]  }
   0x9   :  { %701 = vmatprep.mubr.bf16.mxu0 %v158_v14  ;;  %v2682_v25 = vld [vmem:[%s3977_s2 + $0xb0] ss:$8 sps:$4 sm:$0xff]   ;;  %v2683_v26 = vld [vmem:[%s3977_s2 + $0xc4] ss:$8 sps:$4 sm:$0xff]   ;;  %v2685_v27 = vld [vmem:[%s3977_s2 + $0xc0] ss:$8 sps:$4 sm:$0xff]  }
   0xa   :  { %v2686_v28 = vld [vmem:[%s3977_s2 + $0xd4] ss:$8 sps:$4 sm:$0xff]   ;;  %v2688_v29 = vld [vmem:[%s3977_s2 + $0xd0] ss:$8 sps:$4 sm:$0xff]   ;;  %v2689_v30 = vld [vmem:[%s3977_s2 + $0xe4] ss:$8 sps:$4 sm:$0xff]  }
   0xb   :  { %674 = vmatpush1.bf16.msra.mxu0 %v2655_v5  ;;  %v2691_v31 = vld [vmem:[%s3977_s2 + $0xe0] ss:$8 sps:$4 sm:$0xff]   ;;  %v2692_v32 = vld [vmem:[%s3977_s2 + $0xf4] ss:$8 sps:$4 sm:$0xff]   ;;  %v2694_v33 = vld [vmem:[%s3977_s2 + $0xf0] ss:$8 sps:$4 sm:$0xff]  }
   0xc   :  { %675 = vmatprep.subr.bf16.mxu0 %v2656_v6  ;;  %v2697_v34 = vld [vmem:[%s3977_s2 + $0x104] ss:$8 sps:$4 sm:$0xff]   ;;  %v54_v36 = vld [vmem:[%s3975_s0 + $0x18] sm:$0xff]  ;;  %v2695_v38 = vld [vmem:[%s3977_s2 + $0x100] ss:$8 sps:$4 sm:$0xff]  }
   0xd   :  { %v51_v35 = vld [vmem:[%s3975_s0] sm:$0xff]  ;;  %v160_v39 = vpack.c.bf16 %v54_v36, %v54_v36  ;;  %v2700_v40 = vld [vmem:[%s3977_s2 + $0x114] ss:$8 sps:$4 sm:$0xff]   ;;  %v2698_v41 = vld [vmem:[%s3977_s2 + $0x110] ss:$8 sps:$4 sm:$0xff]  }
   0xe   :  { %v157_v37 = vpack.c.bf16 %v51_v35, %v51_v35  ;;  %v2703_v42 = vld [vmem:[%s3977_s2 + $0x124] ss:$8 sps:$4 sm:$0xff]   ;;  %v2701_v43 = vld [vmem:[%s3977_s2 + $0x120] ss:$8 sps:$4 sm:$0xff]   ;;  %v2706_v44 = vld [vmem:[%s3977_s2 + $0x134] ss:$8 sps:$4 sm:$0xff]  }
   0xf   :  { %676 = vmatpush1.bf16.msra.mxu0 %v2658_v7  ;;  %v2704_v45 = vld [vmem:[%s3977_s2 + $0x130] ss:$8 sps:$4 sm:$0xff]   ;;  %v2709_v46 = vld [vmem:[%s3977_s2 + $0x144] ss:$8 sps:$4 sm:$0xff]   ;;  %v2707_v50 = vld [vmem:[%s3977_s2 + $0x140] ss:$8 sps:$4 sm:$0xff]  }
  0x10   :  { %677 = vmatprep.subr.bf16.mxu0 %v2659_v8  ;;  %v2794_v47 = vld [vmem:[%s3979_s4 + $0x40] sm:$0xff]   ;;  %v2796_v49 = vld [vmem:[%s3979_s4 + $0x48] sm:$0xff]   ;;  %v2712_v51 = vld [vmem:[%s3977_s2 + $0x154] ss:$8 sps:$4 sm:$0xff]  }
  0x11   :  { %v2795_v48 = vld [vmem:[%s3979_s4] sm:$0xff]   ;;  %2544 = vmatprep.subr.bf16.mxu1 %v2794_v47  ;;  %v2710_v52 = vld [vmem:[%s3977_s2 + $0x150] ss:$8 sps:$4 sm:$0xff]   ;;  %v2797_v53 = vld [vmem:[%s3979_s4 + $0x8] sm:$0xff]  }
  0x12   :  { %2545 = vmatpush3.bf16.msra.mxu1 %v2795_v48  ;;  %v2715_v54 = vld [vmem:[%s3977_s2 + $0x164] ss:$8 sps:$4 sm:$0xff]   ;;  %v2798_v55 = vld [vmem:[%s3979_s4 + $0x50] sm:$0xff]   ;;  %v2800_v57 = vld [vmem:[%s3979_s4 + $0x58] sm:$0xff]  }
  0x13   :  { %678 = vmatpush1.bf16.msra.mxu0 %v2661_v9  ;;  %2546 = vmatprep.subr.bf16.mxu1 %v2796_v49  ;;  %v2799_v56 = vld [vmem:[%s3979_s4 + $0x10] sm:$0xff]   ;;  %v2713_v58 = vld [vmem:[%s3977_s2 + $0x160] ss:$8 sps:$4 sm:$0xff]   ;;  %v2801_v60 = vld [vmem:[%s3979_s4 + $0x18] sm:$0xff]  }
  0x14   :  { %679 = vmatprep.subr.bf16.mxu0 %v2662_v10  ;;  %v2718_v59 = vld [vmem:[%s3977_s2 + $0x174] ss:$8 sps:$4 sm:$0xff]   ;;  %v2802_v61 = vld [vmem:[%s3979_s4 + $0x60] sm:$0xff]   ;;  %v2716_v62 = vld [vmem:[%s3977_s2 + $0x170] ss:$8 sps:$4 sm:$0xff]  }
  0x15   :  { %v2721_v63 = vld [vmem:[%s3977_s2 + $0x184] ss:$8 sps:$4 sm:$0xff]   ;;  %v2719_v2 = vld [vmem:[%s3977_s2 + $0x180] ss:$8 sps:$4 sm:$0xff]   ;;  %v2724_v3 = vld [vmem:[%s3977_s2 + $0x194] ss:$8 sps:$4 sm:$0xff]  }
  0x16   :  { %2547 = vmatpush3.bf16.msra.mxu1 %v2797_v53  ;;  %v2803_v0 = vld [vmem:[%s3979_s4 + $0x20] sm:$0xff]   ;;  %v2804_v1 = vld [vmem:[%s3979_s4 + $0x68] sm:$0xff]   ;;  %v2806_v5 = vld [vmem:[%s3979_s4 + $0x70] sm:$0xff]  }
  0x17   :  { %680 = vmatpush1.bf16.msra.mxu0 %v2664_v11  ;;  %2548 = vmatprep.subr.bf16.mxu1 %v2798_v55  ;;  %v2805_v4 = vld [vmem:[%s3979_s4 + $0x28] sm:$0xff]   ;;  %v2722_v6 = vld [vmem:[%s3977_s2 + $0x190] ss:$8 sps:$4 sm:$0xff]   ;;  %v2730_v9 = vld [vmem:[%s3977_s2 + $0x1b4] ss:$8 sps:$4 sm:$0xff]  }
  0x18   :  { %681 = vmatprep.subr.bf16.mxu0 %v2665_v12  ;;  %v2727_v7 = vld [vmem:[%s3977_s2 + $0x1a4] ss:$8 sps:$4 sm:$0xff]   ;;  %v2725_v8 = vld [vmem:[%s3977_s2 + $0x1a0] ss:$8 sps:$4 sm:$0xff]   ;;  %v2728_v10 = vld [vmem:[%s3977_s2 + $0x1b0] ss:$8 sps:$4 sm:$0xff]  }
  0x19   :  { %v2733_v11 = vld [vmem:[%s3977_s2 + $0x1c4] ss:$8 sps:$4 sm:$0xff]   ;;  %v2731_v12 = vld [vmem:[%s3977_s2 + $0x1c0] ss:$8 sps:$4 sm:$0xff]   ;;  %v2736_v13 = vld [vmem:[%s3977_s2 + $0x1d4] ss:$8 sps:$4 sm:$0xff]  }
  0x1a   :  { %2549 = vmatpush3.bf16.msra.mxu1 %v2799_v56  ;;  %v2734_v14 = vld [vmem:[%s3977_s2 + $0x1d0] ss:$8 sps:$4 sm:$0xff]  }
  0x1b   :  { %682 = vmatpush1.bf16.msra.mxu0 %v2667_v15  ;;  %2550 = vmatprep.subr.bf16.mxu1 %v2800_v57  ;;  %v2739_v15 = vld [vmem:[%s3977_s2 + $0x1e4] ss:$8 sps:$4 sm:$0xff]  }
  0x1c   :  { %683 = vmatprep.subr.bf16.mxu0 %v2668_v16  ;;  %v2737_v16 = vld [vmem:[%s3977_s2 + $0x1e0] ss:$8 sps:$4 sm:$0xff]  }
  0x1e   :  { %2551 = vmatpush3.bf16.msra.mxu1 %v2801_v60 }
  0x1f   :  { %684 = vmatpush1.bf16.msra.mxu0 %v2670_v17  ;;  %2552 = vmatprep.subr.bf16.mxu1 %v2802_v61  ;;  %v2742_v17 = vld [vmem:[%s3977_s2 + $0x1f4] ss:$8 sps:$4 sm:$0xff]  }
  0x20   :  { %685 = vmatprep.subr.bf16.mxu0 %v2671_v18  ;;  %v2740_v18 = vld [vmem:[%s3977_s2 + $0x1f0] ss:$8 sps:$4 sm:$0xff]  }
  0x22   :  { %2553 = vmatpush3.bf16.msra.mxu1 %v2803_v0 }
  0x23   :  { %686 = vmatpush1.bf16.msra.mxu0 %v2673_v19  ;;  %2554 = vmatprep.subr.bf16.mxu1 %v2804_v1  ;;  %v53_v19 = vld [vmem:[%s3975_s0 + $0x10] sm:$0xff] }
  0x24   :  { %687 = vmatprep.subr.bf16.mxu0 %v2674_v20  ;;  %v2745_v20 = vld [vmem:[%s3977_s2 + $0x204] ss:$8 sps:$4 sm:$0xff]  }
  0x26   :  { %2555 = vmatpush3.bf16.msra.mxu1 %v2805_v4 }
  0x27   :  { %688 = vmatpush1.bf16.msra.mxu0 %v2676_v21  ;;  %2556 = vmatprep.subr.bf16.mxu1 %v2806_v5  ;;  %v56_v21 = vld [vmem:[%s3975_s0 + $0x28] sm:$0xff] }
  0x28   :  { %689 = vmatprep.subr.bf16.mxu0 %v2677_v22  ;;  %v2743_v22 = vld [vmem:[%s3977_s2 + $0x200] ss:$8 sps:$4 sm:$0xff]  }
  0x2b   :  { %690 = vmatpush1.bf16.msra.mxu0 %v2679_v23  ;;  %v159_v23 = vpack.c.bf16 %v53_v19, %v53_v19 }
  0x2c   :  { %691 = vmatprep.subr.bf16.mxu0 %v2680_v24  ;;  %v2748_v24 = vld [vmem:[%s3977_s2 + $0x214] ss:$8 sps:$4 sm:$0xff]  }
  0x2f   :  { %692 = vmatpush1.bf16.msra.mxu0 %v2682_v25  ;;  %v162_v25 = vpack.c.bf16 %v56_v21, %v56_v21 }
  0x30   :  { %693 = vmatprep.subr.bf16.mxu0 %v2683_v26  ;;  %v2746_v26 = vld [vmem:[%s3977_s2 + $0x210] ss:$8 sps:$4 sm:$0xff]  }
  0x33   :  { %694 = vmatpush1.bf16.msra.mxu0 %v2685_v27  ;;  %v2751_v27 = vld [vmem:[%s3977_s2 + $0x224] ss:$8 sps:$4 sm:$0xff]  }
  0x34   :  { %695 = vmatprep.subr.bf16.mxu0 %v2686_v28  ;;  %v2749_v28 = vld [vmem:[%s3977_s2 + $0x220] ss:$8 sps:$4 sm:$0xff]  }
  0x37   :  { %696 = vmatpush1.bf16.msra.mxu0 %v2688_v29  ;;  %v2754_v29 = vld [vmem:[%s3977_s2 + $0x234] ss:$8 sps:$4 sm:$0xff]  }
  0x38   :  { %697 = vmatprep.subr.bf16.mxu0 %v2689_v30 }
  0x3b   :  { %698 = vmatpush1.bf16.msra.mxu0 %v2691_v31 }
  0x3c   :  { %699 = vmatprep.subr.bf16.mxu0 %v2692_v32 }
  0x3f   :  { %700 = vmatpush1.bf16.msra.mxu0 %v2694_v33 }
  0x40   :  { %710 = vmatprep.subr.bf16.mxu0 %v2697_v34 }
  0x42   :  { %702 = vmatmul.mubr.bf16.vlgmr.msra.gmra.mrb[0].mxu0 %v157_v37 }
  0x43   :  { %711 = vmatpush1.bf16.msra.mxu0 %v2695_v38  ;;  %742 = vmatprep.mubr.bf16.mxu0 %v160_v39 }
  0x44   :  { %712 = vmatprep.subr.bf16.mxu0 %v2700_v40 }
  0x47   :  { %713 = vmatpush1.bf16.msra.mxu0 %v2698_v41 }
  0x48   :  { %714 = vmatprep.subr.bf16.mxu0 %v2703_v42 }
  0x4b   :  { %715 = vmatpush1.bf16.msra.mxu0 %v2701_v43 }
  0x4c   :  { %716 = vmatprep.subr.bf16.mxu0 %v2706_v44 }
  0x4f   :  { %717 = vmatpush1.bf16.msra.mxu0 %v2704_v45 }
  0x50   :  { %718 = vmatprep.subr.bf16.mxu0 %v2709_v46 }
  0x53   :  { %719 = vmatpush1.bf16.msra.mxu0 %v2707_v50 }
  0x54   :  { %720 = vmatprep.subr.bf16.mxu0 %v2712_v51 }
  0x57   :  { %721 = vmatpush1.bf16.msra.mxu0 %v2710_v52 }
  0x58   :  { %722 = vmatprep.subr.bf16.mxu0 %v2715_v54 }
  0x5b   :  { %723 = vmatpush1.bf16.msra.mxu0 %v2713_v58 }
  0x5c   :  { %724 = vmatprep.subr.bf16.mxu0 %v2718_v59 }
  0x5f   :  { %725 = vmatpush1.bf16.msra.mxu0 %v2716_v62 }
  0x60   :  { %726 = vmatprep.subr.bf16.mxu0 %v2721_v63 }
  0x63   :  { %727 = vmatpush1.bf16.msra.mxu0 %v2719_v2 }
  0x64   :  { %728 = vmatprep.subr.bf16.mxu0 %v2724_v3 }
  0x67   :  { %729 = vmatpush1.bf16.msra.mxu0 %v2722_v6 }
  0x68   :  { %730 = vmatprep.subr.bf16.mxu0 %v2727_v7 }
  0x6b   :  { %731 = vmatpush1.bf16.msra.mxu0 %v2725_v8 }
  0x6c   :  { %732 = vmatprep.subr.bf16.mxu0 %v2730_v9 }
  0x6f   :  { %733 = vmatpush1.bf16.msra.mxu0 %v2728_v10 }
  0x70   :  { %734 = vmatprep.subr.bf16.mxu0 %v2733_v11 }
  0x73   :  { %735 = vmatpush1.bf16.msra.mxu0 %v2731_v12 }
  0x74   :  { %736 = vmatprep.subr.bf16.mxu0 %v2736_v13 }
  0x77   :  { %737 = vmatpush1.bf16.msra.mxu0 %v2734_v14 }
  0x78   :  { %738 = vmatprep.subr.bf16.mxu0 %v2739_v15 }
  0x7b   :  { %739 = vmatpush1.bf16.msra.mxu0 %v2737_v16 }
  0x7c   :  { %740 = vmatprep.subr.bf16.mxu0 %v2742_v17 }
  0x7f   :  { %741 = vmatpush1.bf16.msra.mxu0 %v2740_v18 }
  0x80   :  { %751 = vmatprep.subr.bf16.mxu0 %v2745_v20 }
  0x82   :  { %743 = vmatmul.mubr.bf16.vlgmr.msra.gmra.mrb[0].mxu0 %v159_v23 }
  0x83   :  { %752 = vmatpush1.bf16.msra.mxu0 %v2743_v22  ;;  %783 = vmatprep.mubr.bf16.mxu0 %v162_v25 }
  0x84   :  { %753 = vmatprep.subr.bf16.mxu0 %v2748_v24 }
  0x87   :  { %754 = vmatpush1.bf16.msra.mxu0 %v2746_v26 }
  0x88   :  { %755 = vmatprep.subr.bf16.mxu0 %v2751_v27 }
  0x89   :  { %21 = vsyncpa [#allocation3], 0  ;;  %v2752_v30 = vld [vmem:[%s3977_s2 + $0x230] ss:$8 sps:$4 sm:$0xff]   ;;  %v2757_v31 = vld [vmem:[%s3977_s2 + $0x244] ss:$8 sps:$4 sm:$0xff]   ;;  %v165_v2 = vlaneseq }
  0x8a   :  { %v2755_v32 = vld [vmem:[%s3977_s2 + $0x240] ss:$8 sps:$4 sm:$0xff]   ;;  %v2760_v33 = vld [vmem:[%s3977_s2 + $0x254] ss:$8 sps:$4 sm:$0xff]   ;;  %v2758_v34 = vld [vmem:[%s3977_s2 + $0x250] ss:$8 sps:$4 sm:$0xff]  }
  0x8b   :  { %756 = vmatpush1.bf16.msra.mxu0 %v2749_v28  ;;  %v2763_v35 = vld [vmem:[%s3977_s2 + $0x264] ss:$8 sps:$4 sm:$0xff]   ;;  %v2761_v36 = vld [vmem:[%s3977_s2 + $0x260] ss:$8 sps:$4 sm:$0xff]   ;;  %v2766_v37 = vld [vmem:[%s3977_s2 + $0x274] ss:$8 sps:$4 sm:$0xff]  }
  0x8c   :  { %757 = vmatprep.subr.bf16.mxu0 %v2754_v29  ;;  %v2764_v38 = vld [vmem:[%s3977_s2 + $0x270] ss:$8 sps:$4 sm:$0xff]   ;;  %v2769_v39 = vld [vmem:[%s3977_s2 + $0x284] ss:$8 sps:$4 sm:$0xff]   ;;  %v2767_v40 = vld [vmem:[%s3977_s2 + $0x280] ss:$8 sps:$4 sm:$0xff]  }
  0x8d   :  { %v2772_v41 = vld [vmem:[%s3977_s2 + $0x294] ss:$8 sps:$4 sm:$0xff]   ;;  %v2770_v42 = vld [vmem:[%s3977_s2 + $0x290] ss:$8 sps:$4 sm:$0xff]   ;;  %v2775_v43 = vld [vmem:[%s3977_s2 + $0x2a4] ss:$8 sps:$4 sm:$0xff]  }
  0x8e   :  { %v2773_v44 = vld [vmem:[%s3977_s2 + $0x2a0] ss:$8 sps:$4 sm:$0xff]   ;;  %v2778_v45 = vld [vmem:[%s3977_s2 + $0x2b4] ss:$8 sps:$4 sm:$0xff]   ;;  %v2776_v46 = vld [vmem:[%s3977_s2 + $0x2b0] ss:$8 sps:$4 sm:$0xff]  }
  0x8f   :  { %758 = vmatpush1.bf16.msra.mxu0 %v2752_v30  ;;  %v2781_v47 = vld [vmem:[%s3977_s2 + $0x2c4] ss:$8 sps:$4 sm:$0xff]   ;;  %v2779_v48 = vld [vmem:[%s3977_s2 + $0x2c0] ss:$8 sps:$4 sm:$0xff]   ;;  %v2784_v49 = vld [vmem:[%s3977_s2 + $0x2d4] ss:$8 sps:$4 sm:$0xff]  }
  0x90   :  { %759 = vmatprep.subr.bf16.mxu0 %v2757_v31  ;;  %v2782_v50 = vld [vmem:[%s3977_s2 + $0x2d0] ss:$8 sps:$4 sm:$0xff]   ;;  %v2787_v51 = vld [vmem:[%s3977_s2 + $0x2e4] ss:$8 sps:$4 sm:$0xff]   ;;  %v2785_v52 = vld [vmem:[%s3977_s2 + $0x2e0] ss:$8 sps:$4 sm:$0xff]  }
  0x91   :  { %v2790_v53 = vld [vmem:[%s3977_s2 + $0x2f4] ss:$8 sps:$4 sm:$0xff]   ;;  %v2788_v54 = vld [vmem:[%s3977_s2 + $0x2f0] ss:$8 sps:$4 sm:$0xff]   ;;  %v55_v55 = vld [vmem:[%s3975_s0 + $0x20] sm:$0xff]  ;;  %v3030_v59 = vmov 0  }
  0x92   :  { %v2793_v56 = vld [vmem:[%s3977_s2 + $0x304] ss:$8 sps:$4 sm:$0xff]   ;;  %v161_v57 = vpack.c.bf16 %v55_v55, %v55_v55  ;;  %v2791_v58 = vld [vmem:[%s3977_s2 + $0x300] ss:$8 sps:$4 sm:$0xff]   ;;  %v57_v60 = vld [vmem:[%s3975_s0 + $0x30] sm:$0xff]  ;;  %vm665_vm0 = vcmask 130048  }
  0x93   :  { %760 = vmatpush1.bf16.msra.mxu0 %v2755_v32  ;;  %v163_v61 = vpack.c.bf16 %v57_v60, %v57_v60  ;;  %v2807_v62 = vld [vmem:[%s3979_s4 + $0x30] sm:$0xff]   ;;  %v2808_v63 = vld [vmem:[%s3979_s4 + $0x78] sm:$0xff]   ;;  %v3031_v1 = vmov 0.0   ;;  %v3481_v3 = vshrl.u32 %v165_v2, 7  ;;  %v156_v5 = vld [vmem:[%s3978_s3] sm:$0x3] }
  0x94   :  { %761 = vmatprep.subr.bf16.mxu0 %v2760_v33  ;;  %2557 = vmatpush3.bf16.msra.mxu1 %v2807_v62  ;;  %v2809_v0 = vld [vmem:[%s3979_s4 + $0x38] sm:$0xff]   ;;  %v2810_v16 = vld [vmem:[%s3981_s6] sm:$0xff]   ;;  %v2811_v18 = vld [vmem:[%s3981_s6 + $0x8] sm:$0xff]   ;;  %vm3032_vm1 = vmmov 0   ;;  %vm1123_vm2 = vcmask 523264   ;;  %s3033_s24 = smov 96  }
  0x95   :  { %2558 = vmatprep.subr.bf16.mxu1 %v2808_v63  ;;  %v3484_v4 = vsub.s32 0, %v3481_v3  ;;  %v3490_v6 = vsub.s32 1, %v3481_v3  ;;  %v2812_v19 = vld [vmem:[%s3981_s6 + $0x10] sm:$0xff]   ;;  %v2813_v20 = vld [vmem:[%s3981_s6 + $0x18] sm:$0xff]   ;;  %v2814_v21 = vld [vmem:[%s3981_s6 + $0x20] sm:$0xff]   ;;  %vm1159_vm3 = vcmask 261120  }
  0x96   :  { %v2815_v22 = vld [vmem:[%s3981_s6 + $0x28] sm:$0xff]   ;;  %v2816_v23 = vld [vmem:[%s3981_s6 + $0x30] sm:$0xff]   ;;  %v2817_v24 = vld [vmem:[%s3981_s6 + $0x38] sm:$0xff]  }
  0x97   :  { %762 = vmatpush1.bf16.msra.mxu0 %v2758_v34  ;;  %v168_v7 = vrot.slane %v156_v5, %v3484_v4  ;;  %v172_v8 = vrot.slane %v156_v5, %v3490_v6  ;;  %v2386_v26 = vld [vmem:[%s3980_s5] ss:$0 sm:$0xff]  ;;  %v2837_v60 = vld [vmem:[%s3985_s10 + $0x54] ss:$8 sps:$4 sm:$0xff]   ;;  %v2840_v62 = vld [vmem:[%s3985_s10 + $0x64] ss:$8 sps:$4 sm:$0xff]  }
  0x98   :  { %763 = vmatprep.subr.bf16.mxu0 %v2763_v35  ;;  %2559 = vmatpush3.bf16.msra.mxu1 %v2809_v0  ;;  %v2403_v34 = vld [vmem:[%s3982_s7] ss:$0 sm:$0xff]  ;;  %v2843_v0 = vld [vmem:[%s3985_s10 + $0x74] ss:$8 sps:$4 sm:$0xff]   ;;  %v2847_v5 = vld [vmem:[%s3987_s12 + $0x10] ss:$28 sps:$4 sm:$0xff]  }
  0x99   :  { %2600 = vmatprep.subr.bf16.mxu1 %v3031_v1  ;;  %v2826_v55 = vld [vmem:[%s3985_s10 + $0x20] ss:$8 sps:$4 sm:$0xff]  }
  0x9a   :  { %v2838_v63 = vld [vmem:[%s3985_s10 + $0x60] ss:$8 sps:$4 sm:$0xff]  }
  0x9b   :  { %764 = vmatpush1.bf16.msra.mxu0 %v2761_v36  ;;  %v2846_v2 = vld [vmem:[%s3987_s12 + $0x4] ss:$28 sps:$4 sm:$0xff]  }
  0x9c   :  { %765 = vmatprep.subr.bf16.mxu0 %v2766_v37 }
  0x9f   :  { %766 = vmatpush1.bf16.msra.mxu0 %v2764_v38 }
  0xa0   :  { %767 = vmatprep.subr.bf16.mxu0 %v2769_v39  ;;  %v2818_v39 = vld [vmem:[%s3983_s8] sm:$0xff]  }
  0xa3   :  { %768 = vmatpush1.bf16.msra.mxu0 %v2767_v40 }
  0xa4   :  { %769 = vmatprep.subr.bf16.mxu0 %v2772_v41 }
  0xa7   :  { %770 = vmatpush1.bf16.msra.mxu0 %v2770_v42 }
  0xa8   :  { %771 = vmatprep.subr.bf16.mxu0 %v2775_v43  ;;  %v2819_v43 = vld [vmem:[%s3983_s8 + $0x8] sm:$0xff]  }
  0xab   :  { %772 = vmatpush1.bf16.msra.mxu0 %v2773_v44  ;;  %v2822_v44 = vld [vmem:[%s3985_s10 + $0x4] ss:$8 sps:$4 sm:$0xff]  }
  0xac   :  { %773 = vmatprep.subr.bf16.mxu0 %v2778_v45 }
  0xaf   :  { %774 = vmatpush1.bf16.msra.mxu0 %v2776_v46  ;;  %v1125_v46 = vld [vmem:[%s3976_s1] sm:$0xff] }
  0xb0   :  { %775 = vmatprep.subr.bf16.mxu0 %v2781_v47 }
  0xb3   :  { %776 = vmatpush1.bf16.msra.mxu0 %v2779_v48 }
  0xb4   :  { %777 = vmatprep.subr.bf16.mxu0 %v2784_v49 }
  0xb7   :  { %778 = vmatpush1.bf16.msra.mxu0 %v2782_v50  ;;  %v2820_v50 = vld [vmem:[%s3985_s10] ss:$8 sps:$4 sm:$0xff]  }
  0xb8   :  { %779 = vmatprep.subr.bf16.mxu0 %v2787_v51 }
  0xbb   :  { %780 = vmatpush1.bf16.msra.mxu0 %v2785_v52  ;;  %v2825_v52 = vld [vmem:[%s3985_s10 + $0x14] ss:$8 sps:$4 sm:$0xff]  }
  0xbc   :  { %781 = vmatprep.subr.bf16.mxu0 %v2790_v53  ;;  %v2823_v53 = vld [vmem:[%s3985_s10 + $0x10] ss:$8 sps:$4 sm:$0xff]  }
  0xbf   :  { %782 = vmatpush1.bf16.msra.mxu0 %v2788_v54  ;;  %v2828_v54 = vld [vmem:[%s3985_s10 + $0x24] ss:$8 sps:$4 sm:$0xff]  }
  0xc0   :  { %792 = vmatprep.subr.bf16.mxu0 %v2793_v56  ;;  %v2831_v56 = vld [vmem:[%s3985_s10 + $0x34] ss:$8 sps:$4 sm:$0xff]  }
  0xc2   :  { %784 = vmatmul.mubr.bf16.vlgmr.msra.gmra.mrb[0].mxu0 %v161_v57  ;;  %v2829_v57 = vld [vmem:[%s3985_s10 + $0x30] ss:$8 sps:$4 sm:$0xff]  }
  0xc3   :  { %793 = vmatpush1.bf16.msra.mxu0 %v2791_v58  ;;  %824 = vmatprep.mubr.bf16.mxu0 %v3030_v59  ;;  %v2834_v58 = vld [vmem:[%s3985_s10 + $0x44] ss:$8 sps:$4 sm:$0xff]  }
  0xce   :  { %2385 = vmatmul.mubr.msk.bf16.vlgmr.msra.gmra.mrb[0].mxu0 %vm665_vm0, %v163_v61  ;;  %v2835_v61 = vld [vmem:[%s3985_s10 + $0x50] ss:$8 sps:$4 sm:$0xff]  }
 0x1a1   :  { %v826_v9 = vpop.f32.mrb[0].mxu0 }
 0x1a2   :  { %v2628_v10 = vadd.f32 %v826_v9, %v168_v7  ;;  %v828_v11 = vpop.f32.mrb[1].mxu0  ;;  %v2849_v7 = vld [vmem:[%s3987_s12 + $0x14] ss:$28 sps:$4 sm:$0xff]   ;;  %v2855_v9 = vld [vmem:[%s3987_s12 + $0x4c] ss:$28 sps:$4 sm:$0xff]  }
 0x1a3   :  { %v830_v12 = vpop.f32.mrb[2].mxu0  ;;  %v2629_v13 = vadd.f32 %v828_v11, %v172_v8  ;;  %2181 = vmatprep.subr.bf16.mxu0 %v2849_v7  ;;  %v2853_v8 = vld [vmem:[%s3987_s12 + $0x48] ss:$28 sps:$4 sm:$0xff]   ;;  %v2922_v7 = vld [vmem:[%s3987_s12 + $0x2d8] ss:$28 sps:$4 sm:$0xff]  }
 0x1a4   :  { %v831_v14 = vpop.f32.mrb[3].mxu0  ;;  %v866_v17 = vpack.c.bf16 %v2628_v10, %v2628_v10  ;;  %2182 = vmatpush1.bf16.msra.mxu0 %v2847_v5  ;;  %v2859_v10 = vld [vmem:[%s3987_s12 + $0x80] ss:$28 sps:$4 sm:$0xff]   ;;  %v2865_v12 = vld [vmem:[%s3987_s12 + $0xb8] ss:$28 sps:$4 sm:$0xff]  }
 0x1a5   :  { %v867_v15 = vpack.c.bf16 %v2629_v13, %v2629_v13  ;;  %2183 = vmatprep.subr.bf16.mxu0 %v2855_v9  ;;  %v2861_v11 = vld [vmem:[%s3987_s12 + $0x84] ss:$28 sps:$4 sm:$0xff]   ;;  %v2867_v13 = vld [vmem:[%s3987_s12 + $0xbc] ss:$28 sps:$4 sm:$0xff]   ;;  %v2871_v14 = vld [vmem:[%s3987_s12 + $0xf0] ss:$28 sps:$4 sm:$0xff]  }
 0x1a6   :  { %v2924_v5 = vld [vmem:[%s3987_s12 + $0x2dc] ss:$28 sps:$4 sm:$0xff]   ;;  %v2928_v9 = vld [vmem:[%s3987_s12 + $0x310] ss:$28 sps:$4 sm:$0xff]  }
 0x1a7   :  { %1002 = vmatprep.mubr.bf16.mxu1 %v867_v15  ;;  %v2873_v15 = vld [vmem:[%s3987_s12 + $0xf4] ss:$28 sps:$4 sm:$0xff]  }
 0x1a8   :  { %1003 = vmatmul.mubr.bf16.vlgmr.msra.gmra.mrb[0].mxu1 %v866_v17  ;;  %2184 = vmatpush1.bf16.msra.mxu0 %v2853_v8  ;;  %v2879_v17 = vld [vmem:[%s3987_s12 + $0x12c] ss:$28 sps:$4 sm:$0xff]   ;;  %v2930_v8 = vld [vmem:[%s3987_s12 + $0x314] ss:$28 sps:$4 sm:$0xff]  }
 0x1a9   :  { %2601 = vmatpush3.bf16.msra.mxu1 %v2810_v16  ;;  %2616 = vmatprep.mubr.msk.bf16.mxu1 %vm3032_vm1, %v3031_v1  ;;  %v2877_v16 = vld [vmem:[%s3987_s12 + $0x128] ss:$28 sps:$4 sm:$0xff]  }
 0x1aa   :  { %2602 = vmatprep.subr.bf16.mxu1 %v3031_v1  ;;  %2185 = vmatprep.subr.bf16.mxu0 %v2861_v11  ;;  %v2931_v11 = vld [vmem:[%s3987_s12 + $0x320] ss:$28 sps:$4 sm:$0xff]  }
 0x1ac   :  { %2186 = vmatpush1.bf16.msra.mxu0 %v2859_v10  ;;  %v2933_v10 = vld [vmem:[%s3987_s12 + $0x324] ss:$28 sps:$4 sm:$0xff]  }
 0x1ad   :  { %2603 = vmatpush3.bf16.msra.mxu1 %v2811_v18  ;;  %2187 = vmatprep.subr.bf16.mxu0 %v2867_v13  ;;  %v2883_v18 = vld [vmem:[%s3987_s12 + $0x160] ss:$28 sps:$4 sm:$0xff]   ;;  %v2934_v13 = vld [vmem:[%s3987_s12 + $0x348] ss:$28 sps:$4 sm:$0xff]  }
 0x1ae   :  { %2604 = vmatprep.subr.bf16.mxu1 %v3031_v1 }
 0x1b0   :  { %2188 = vmatpush1.bf16.msra.mxu0 %v2865_v12  ;;  %v2936_v12 = vld [vmem:[%s3987_s12 + $0x34c] ss:$28 sps:$4 sm:$0xff]  }
 0x1b1   :  { %2605 = vmatpush3.bf16.msra.mxu1 %v2812_v19  ;;  %2189 = vmatprep.subr.bf16.mxu0 %v2873_v15  ;;  %v2885_v19 = vld [vmem:[%s3987_s12 + $0x164] ss:$28 sps:$4 sm:$0xff]   ;;  %v2937_v15 = vld [vmem:[%s3987_s12 + $0x358] ss:$28 sps:$4 sm:$0xff]  }
 0x1b2   :  { %2606 = vmatprep.subr.bf16.mxu1 %v3031_v1 }
 0x1b4   :  { %2190 = vmatpush1.bf16.msra.mxu0 %v2871_v14  ;;  %v2939_v14 = vld [vmem:[%s3987_s12 + $0x35c] ss:$28 sps:$4 sm:$0xff]  }
 0x1b5   :  { %2607 = vmatpush3.bf16.msra.mxu1 %v2813_v20  ;;  %2191 = vmatprep.subr.bf16.mxu0 %v2879_v17  ;;  %v2889_v20 = vld [vmem:[%s3987_s12 + $0x198] ss:$28 sps:$4 sm:$0xff]   ;;  %v1220_v17 = vld [vmem:[%s3986_s11] sm:$0x3] }
 0x1b6   :  { %2608 = vmatprep.subr.bf16.mxu1 %v3031_v1 }
 0x1b8   :  { %2192 = vmatpush1.bf16.msra.mxu0 %v2877_v16  ;;  %v2942_v16 = vld [vmem:[%s3987_s12 + $0xc] ss:$28 sps:$4 sm:$0xff]  }
 0x1b9   :  { %2609 = vmatpush3.bf16.msra.mxu1 %v2814_v21  ;;  %2193 = vmatprep.subr.bf16.mxu0 %v2885_v19  ;;  %v2891_v21 = vld [vmem:[%s3987_s12 + $0x19c] ss:$28 sps:$4 sm:$0xff]   ;;  %v1230_v19 = vrot.slane %v1220_v17, %v3490_v6 }
 0x1ba   :  { %2610 = vmatprep.subr.bf16.mxu1 %v3031_v1 }
 0x1bc   :  { %2194 = vmatpush1.bf16.msra.mxu0 %v2883_v18  ;;  %v1226_v18 = vrot.slane %v1220_v17, %v3484_v4  ;;  %v1484_v17 = vld [vmem:[%s3988_s13] sm:$0x7f] }
 0x1bd   :  { %2611 = vmatpush3.bf16.msra.mxu1 %v2815_v22  ;;  %2195 = vmatprep.subr.bf16.mxu0 %v2891_v21  ;;  %v2895_v22 = vld [vmem:[%s3987_s12 + $0x1d0] ss:$28 sps:$4 sm:$0xff]  }
 0x1be   :  { %2612 = vmatprep.subr.bf16.mxu1 %v3031_v1 }
 0x1c0   :  { %2196 = vmatpush1.bf16.msra.mxu0 %v2889_v20 }
 0x1c1   :  { %2613 = vmatpush3.bf16.msra.mxu1 %v2816_v23  ;;  %v2897_v23 = vld [vmem:[%s3987_s12 + $0x1d4] ss:$28 sps:$4 sm:$0xff]  }
 0x1c2   :  { %2614 = vmatprep.subr.bf16.mxu1 %v3031_v1  ;;  %2197 = vmatprep.subr.bf16.mxu0 %v2897_v23 }
 0x1c4   :  { %2198 = vmatpush1.bf16.msra.mxu0 %v2895_v22 }
 0x1c5   :  { %2615 = vmatpush3.bf16.msra.mxu1 %v2817_v24  ;;  %v2901_v24 = vld [vmem:[%s3987_s12 + $0x208] ss:$28 sps:$4 sm:$0xff]  }
 0x1c6   :  { %2620 = vmatprep.subr.bf16.mxu1 %v3031_v1 }
 0x27b   :  { %v2560_v25 = vpop.f32.mrb[0].mxu1 }
 0x27c   :  { %v2561_v27 = vpop.f32.mrb[1].mxu1 }
 0x27d   :  { %v2562_v28 = vadd.f32 %v2561_v27, %v2560_v25  ;;  %v2563_v29 = vpop.f32.mrb[2].mxu1  ;;  %v2903_v25 = vld [vmem:[%s3987_s12 + $0x20c] ss:$28 sps:$4 sm:$0xff]   ;;  %v2909_v27 = vld [vmem:[%s3987_s12 + $0x244] ss:$28 sps:$4 sm:$0xff]  }
 0x27e   :  { %v2564_v30 = vpop.f32.mrb[3].mxu1  ;;  %2199 = vmatprep.subr.bf16.mxu0 %v2903_v25  ;;  %v2915_v29 = vld [vmem:[%s3987_s12 + $0x27c] ss:$28 sps:$4 sm:$0xff]  }
 0x27f   :  { %v1005_v31 = vadd.f32 %v2562_v28, %v2386_v26  ;;  %2200 = vmatpush1.bf16.msra.mxu0 %v2901_v24  ;;  %v2907_v26 = vld [vmem:[%s3987_s12 + $0x240] ss:$28 sps:$4 sm:$0xff]   ;;  %v2913_v28 = vld [vmem:[%s3987_s12 + $0x278] ss:$28 sps:$4 sm:$0xff]   ;;  %v2919_v30 = vld [vmem:[%s3987_s12 + $0x2b0] ss:$28 sps:$4 sm:$0xff]  }
 0x280   :  { %2201 = vmatprep.subr.bf16.mxu0 %v2909_v27 }
 0x281   :  { %v1010_v32 = vmax.f32 %v1005_v31, 0.0  ;;  %v2921_v31 = vld [vmem:[%s3987_s12 + $0x2b4] ss:$28 sps:$4 sm:$0xff]  }
 0x283   :  { %v1028_v33 = vpack.c.bf16 %v1010_v32, %v1010_v32  ;;  %2202 = vmatpush1.bf16.msra.mxu0 %v2907_v26  ;;  %v2925_v32 = vld [vmem:[%s3987_s12 + $0x2e8] ss:$28 sps:$4 sm:$0xff]  }
 0x284   :  { %2203 = vmatprep.subr.bf16.mxu0 %v2915_v29  ;;  %v2940_v29 = vld [vmem:[%s3987_s12 + $0x8] ss:$28 sps:$4 sm:$0xff]  }
 0x285   :  { %2617 = vmatmul.mubr.bf16.vlgmr.msra.gmra.mrb[4].mxu1 %v1028_v33  ;;  %v2927_v33 = vld [vmem:[%s3987_s12 + $0x2ec] ss:$28 sps:$4 sm:$0xff]  }
 0x286   :  { %2624 = vmatprep.mubr.msk.bf16.mxu1 %vm3032_vm1, %v3031_v1  ;;  %2621 = vmatpush3.bf16.msra.mxu1 %v2818_v39 }
 0x287   :  { %2622 = vmatprep.subr.bf16.mxu1 %v3031_v1  ;;  %v2841_v1 = vld [vmem:[%s3985_s10 + $0x70] ss:$8 sps:$4 sm:$0xff]   ;;  %2204 = vmatpush1.bf16.msra.mxu0 %v2913_v28 }
 0x288   :  { %2205 = vmatprep.subr.bf16.mxu0 %v2921_v31  ;;  %v2945_v31 = vld [vmem:[%s3987_s12 + $0x44] ss:$28 sps:$4 sm:$0xff]  }
 0x28a   :  { %2623 = vmatpush3.bf16.msra.mxu1 %v2819_v43  ;;  %v2852_v43 = vld [vmem:[%s3987_s12 + $0x3c] ss:$28 sps:$4 sm:$0xff]  }
 0x28b   :  { %1313 = vmatprep.subr.bf16.mxu1 %v2822_v44  ;;  %2206 = vmatpush1.bf16.msra.mxu0 %v2919_v30  ;;  %v2850_v44 = vld [vmem:[%s3987_s12 + $0x38] ss:$28 sps:$4 sm:$0xff]  }
 0x28c   :  { %2207 = vmatprep.subr.bf16.mxu0 %v2927_v33  ;;  %v2948_v33 = vld [vmem:[%s3987_s12 + $0x7c] ss:$28 sps:$4 sm:$0xff]  }
 0x28f   :  { %2208 = vmatpush1.bf16.msra.mxu0 %v2925_v32  ;;  %v2943_v32 = vld [vmem:[%s3987_s12 + $0x40] ss:$28 sps:$4 sm:$0xff]  }
 0x290   :  { %2209 = vmatprep.subr.bf16.mxu0 %v2933_v10  ;;  %v2998_v10 = vld [vmem:[%s3987_s12 + $0x2f0] ss:$28 sps:$4 sm:$0xff]  }
 0x293   :  { %2210 = vmatpush1.bf16.msra.mxu0 %v2931_v11  ;;  %v2999_v11 = vld [vmem:[%s3987_s12 + $0x130] ss:$28 sps:$4 sm:$0xff]  }
 0x294   :  { %2211 = vmatprep.subr.bf16.mxu0 %v2939_v14  ;;  %v3002_v14 = vld [vmem:[%s3987_s12 + $0x360] ss:$28 sps:$4 sm:$0xff]  }
 0x297   :  { %2212 = vmatpush1.bf16.msra.mxu0 %v2937_v15  ;;  %v3003_v15 = vld [vmem:[%s3987_s12 + $0x1a0] ss:$28 sps:$4 sm:$0xff]  }
 0x358   :  { %v1117_v35 = vpop.f32.mrb[4].mxu1 }
 0x359   :  { %v1118_v36 = vadd.f32 %v2403_v34, %v1117_v35  ;;  %v2618_v37 = vpop.f32.mrb[5].mxu1  ;;  %v2412_v34 = vld [vmem:[%s3984_s9] ss:$0 sm:$0xff] }
 0x35a   :  { %v1120_v38 = vpop.f32.mrb[6].mxu1 }
 0x35b   :  { %1124 = vst.msk [vmem:[%s3990_s15] sm:$0xff] %vm1123_vm2, %v1118_v36  ;;  %v1126_v40 = vmul.f32 0.5, %v1118_v36  ;;  %v2619_v41 = vpop.f32.mrb[7].mxu1 }
 0x35c   :  { %v2844_v41 = vld [vmem:[%s3987_s12] ss:$28 sps:$4 sm:$0xff]  }
 0x35d   :  { %v1127_v42 = vmul.f32 1.442695, %v1126_v40 }
 0x35f   :  { %3004 = vpow2.f32 %v1127_v42 }
 0x369   :  { %v3005_v45 = vpop.eup %3004 }
 0x36a   :  { %1130 = vrot.lane.b32.xlu0 %v3005_v45, %s3033_s24  ;;  %v2858_v45 = vld [vmem:[%s3987_s12 + $0x74] ss:$28 sps:$4 sm:$0xff]  }
 0x3dc   :  { %v1131_v47 = vpop.permute.xlu0 %1130 }
 0x3dd   :  { %v1133_v48 = vmul.f32 %v1131_v47, %v1125_v46  ;;  %v2856_v46 = vld [vmem:[%s3987_s12 + $0x70] ss:$28 sps:$4 sm:$0xff]  }
 0x3de   :  { %v2864_v47 = vld [vmem:[%s3987_s12 + $0xac] ss:$28 sps:$4 sm:$0xff]  }
 0x3df   :  { %v1134_v49 = vadd.f32 %v1133_v48, %v1118_v36  ;;  %v2862_v48 = vld [vmem:[%s3987_s12 + $0xa8] ss:$28 sps:$4 sm:$0xff]  }
 0x3e1   :  { %v1140_v51 = vpack.c.bf16 %v1134_v49, %v1134_v49  ;;  %v2870_v49 = vld [vmem:[%s3987_s12 + $0xe4] ss:$28 sps:$4 sm:$0xff]  }
 0x3e3   :  { %2625 = vmatmul.mubr.msk.bf16.vlgmr.msra.gmra.mrb[8].mxu1 %vm1159_vm3, %v1140_v51  ;;  %v2876_v51 = vld [vmem:[%s3987_s12 + $0x11c] ss:$28 sps:$4 sm:$0xff]  }
 0x3e4   :  { %1314 = vmatpush1.bf16.msra.mxu1 %v2820_v50  ;;  %1345 = vmatprep.mubr.bf16.mxu1 %v3030_v59  ;;  %v2832_v59 = vld [vmem:[%s3985_s10 + $0x40] ss:$8 sps:$4 sm:$0xff]  }
 0x3e5   :  { %1315 = vmatprep.subr.bf16.mxu1 %v2825_v52  ;;  %v2868_v50 = vld [vmem:[%s3987_s12 + $0xe0] ss:$28 sps:$4 sm:$0xff]   ;;  %v2874_v52 = vld [vmem:[%s3987_s12 + $0x118] ss:$28 sps:$4 sm:$0xff]  }
 0x3e8   :  { %1316 = vmatpush1.bf16.msra.mxu1 %v2823_v53  ;;  %v2882_v53 = vld [vmem:[%s3987_s12 + $0x154] ss:$28 sps:$4 sm:$0xff]  }
 0x3e9   :  { %1317 = vmatprep.subr.bf16.mxu1 %v2828_v54  ;;  %v2880_v54 = vld [vmem:[%s3987_s12 + $0x150] ss:$28 sps:$4 sm:$0xff]  }
 0x3ec   :  { %1318 = vmatpush1.bf16.msra.mxu1 %v2826_v55  ;;  %v2888_v55 = vld [vmem:[%s3987_s12 + $0x18c] ss:$28 sps:$4 sm:$0xff]  }
 0x3ed   :  { %1319 = vmatprep.subr.bf16.mxu1 %v2831_v56  ;;  %v2886_v56 = vld [vmem:[%s3987_s12 + $0x188] ss:$28 sps:$4 sm:$0xff]  }
 0x3f0   :  { %1320 = vmatpush1.bf16.msra.mxu1 %v2829_v57  ;;  %v2894_v57 = vld [vmem:[%s3987_s12 + $0x1c4] ss:$28 sps:$4 sm:$0xff]  }
 0x3f1   :  { %1321 = vmatprep.subr.bf16.mxu1 %v2834_v58  ;;  %v2892_v58 = vld [vmem:[%s3987_s12 + $0x1c0] ss:$28 sps:$4 sm:$0xff]  }
 0x3f4   :  { %1322 = vmatpush1.bf16.msra.mxu1 %v2832_v59  ;;  %v2900_v59 = vld [vmem:[%s3987_s12 + $0x1fc] ss:$28 sps:$4 sm:$0xff]  }
 0x3f5   :  { %1323 = vmatprep.subr.bf16.mxu1 %v2837_v60  ;;  %v2898_v60 = vld [vmem:[%s3987_s12 + $0x1f8] ss:$28 sps:$4 sm:$0xff]  }
 0x3f8   :  { %1324 = vmatpush1.bf16.msra.mxu1 %v2835_v61  ;;  %v2906_v61 = vld [vmem:[%s3987_s12 + $0x234] ss:$28 sps:$4 sm:$0xff]  }
 0x3f9   :  { %1325 = vmatprep.subr.bf16.mxu1 %v2840_v62  ;;  %v2904_v62 = vld [vmem:[%s3987_s12 + $0x230] ss:$28 sps:$4 sm:$0xff]  }
 0x3fc   :  { %1326 = vmatpush1.bf16.msra.mxu1 %v2838_v63  ;;  %v2912_v63 = vld [vmem:[%s3987_s12 + $0x26c] ss:$28 sps:$4 sm:$0xff]  }
 0x3fd   :  { %1327 = vmatprep.subr.bf16.mxu1 %v2843_v0  ;;  %v2910_v0 = vld [vmem:[%s3987_s12 + $0x268] ss:$28 sps:$4 sm:$0xff]  }
 0x400   :  { %1328 = vmatpush1.bf16.msra.mxu1 %v2841_v1  ;;  %v2918_v1 = vld [vmem:[%s3987_s12 + $0x2a4] ss:$28 sps:$4 sm:$0xff]  }
 0x401   :  { %2099 = vmatprep.subr.bf16.mxu1 %v2846_v2  ;;  %v2916_v2 = vld [vmem:[%s3987_s12 + $0x2a0] ss:$28 sps:$4 sm:$0xff]  }
 0x4b6   :  { %v1197_v35 = vpop.f32.mrb[8].mxu1 }
 0x4b7   :  { %v1198_v36 = vadd.f32 %v2412_v34, %v1197_v35  ;;  %v2626_v37 = vpop.f32.mrb[9].mxu1  ;;  %v2946_v34 = vld [vmem:[%s3987_s12 + $0x78] ss:$28 sps:$4 sm:$0xff]  }
 0x4b8   :  { %v1200_v38 = vpop.f32.mrb[10].mxu1  ;;  %v2951_v35 = vld [vmem:[%s3987_s12 + $0xb4] ss:$28 sps:$4 sm:$0xff]   ;;  %v2954_v37 = vld [vmem:[%s3987_s12 + $0xec] ss:$28 sps:$4 sm:$0xff]  }
 0x4b9   :  { %v1203_v39 = vmax.f32 %v1198_v36, 0.0  ;;  %v2627_v40 = vpop.f32.mrb[11].mxu1  ;;  %v2949_v36 = vld [vmem:[%s3987_s12 + $0xb0] ss:$28 sps:$4 sm:$0xff]   ;;  %v2952_v38 = vld [vmem:[%s3987_s12 + $0xe8] ss:$28 sps:$4 sm:$0xff]  }
 0x4ba   :  { %v2955_v40 = vld [vmem:[%s3987_s12 + $0x120] ss:$28 sps:$4 sm:$0xff]  }
 0x4bb   :  { %v1221_v42 = vpack.c.bf16 %v1203_v39, %v1203_v39  ;;  %v2957_v39 = vld [vmem:[%s3987_s12 + $0x124] ss:$28 sps:$4 sm:$0xff]  }
 0x4bd   :  { %1346 = vmatmul.mubr.bf16.vlgmr.msra.gmra.mrb[12].mxu1 %v1221_v42  ;;  %v2958_v42 = vld [vmem:[%s3987_s12 + $0x158] ss:$28 sps:$4 sm:$0xff]  }
 0x4be   :  { %2100 = vmatpush1.bf16.msra.mxu1 %v2844_v41  ;;  %v2960_v41 = vld [vmem:[%s3987_s12 + $0x15c] ss:$28 sps:$4 sm:$0xff]  }
 0x4bf   :  { %2101 = vmatprep.subr.bf16.mxu1 %v2852_v43  ;;  %v2963_v43 = vld [vmem:[%s3987_s12 + $0x194] ss:$28 sps:$4 sm:$0xff]  }
 0x4c2   :  { %2102 = vmatpush1.bf16.msra.mxu1 %v2850_v44  ;;  %v2961_v44 = vld [vmem:[%s3987_s12 + $0x190] ss:$28 sps:$4 sm:$0xff]  }
 0x4c3   :  { %2103 = vmatprep.subr.bf16.mxu1 %v2858_v45  ;;  %v2966_v45 = vld [vmem:[%s3987_s12 + $0x1cc] ss:$28 sps:$4 sm:$0xff]  }
 0x4c6   :  { %2104 = vmatpush1.bf16.msra.mxu1 %v2856_v46  ;;  %v2964_v46 = vld [vmem:[%s3987_s12 + $0x1c8] ss:$28 sps:$4 sm:$0xff]  }
 0x4c7   :  { %2105 = vmatprep.subr.bf16.mxu1 %v2864_v47  ;;  %v2969_v47 = vld [vmem:[%s3987_s12 + $0x204] ss:$28 sps:$4 sm:$0xff]  }
 0x4ca   :  { %2106 = vmatpush1.bf16.msra.mxu1 %v2862_v48  ;;  %v2967_v48 = vld [vmem:[%s3987_s12 + $0x200] ss:$28 sps:$4 sm:$0xff]  }
 0x4cb   :  { %2107 = vmatprep.subr.bf16.mxu1 %v2870_v49  ;;  %v2972_v49 = vld [vmem:[%s3987_s12 + $0x23c] ss:$28 sps:$4 sm:$0xff]  }
 0x4ce   :  { %2108 = vmatpush1.bf16.msra.mxu1 %v2868_v50  ;;  %v2970_v50 = vld [vmem:[%s3987_s12 + $0x238] ss:$28 sps:$4 sm:$0xff]  }
 0x4cf   :  { %2109 = vmatprep.subr.bf16.mxu1 %v2876_v51  ;;  %v2975_v51 = vld [vmem:[%s3987_s12 + $0x274] ss:$28 sps:$4 sm:$0xff]  }
 0x4d2   :  { %2110 = vmatpush1.bf16.msra.mxu1 %v2874_v52  ;;  %v2973_v52 = vld [vmem:[%s3987_s12 + $0x270] ss:$28 sps:$4 sm:$0xff]  }
 0x4d3   :  { %2111 = vmatprep.subr.bf16.mxu1 %v2882_v53  ;;  %v2978_v53 = vld [vmem:[%s3987_s12 + $0x2ac] ss:$28 sps:$4 sm:$0xff]  }
 0x4d6   :  { %2112 = vmatpush1.bf16.msra.mxu1 %v2880_v54  ;;  %v2976_v54 = vld [vmem:[%s3987_s12 + $0x2a8] ss:$28 sps:$4 sm:$0xff]  }
 0x4d7   :  { %2113 = vmatprep.subr.bf16.mxu1 %v2888_v55  ;;  %v2981_v55 = vld [vmem:[%s3987_s12 + $0x2e4] ss:$28 sps:$4 sm:$0xff]  }
 0x4da   :  { %2114 = vmatpush1.bf16.msra.mxu1 %v2886_v56  ;;  %v2979_v56 = vld [vmem:[%s3987_s12 + $0x2e0] ss:$28 sps:$4 sm:$0xff]  }
 0x4db   :  { %2115 = vmatprep.subr.bf16.mxu1 %v2894_v57  ;;  %v2984_v57 = vld [vmem:[%s3987_s12 + $0x31c] ss:$28 sps:$4 sm:$0xff]  }
 0x4de   :  { %2116 = vmatpush1.bf16.msra.mxu1 %v2892_v58  ;;  %v2982_v58 = vld [vmem:[%s3987_s12 + $0x318] ss:$28 sps:$4 sm:$0xff]  }
 0x4df   :  { %2117 = vmatprep.subr.bf16.mxu1 %v2900_v59  ;;  %v2987_v59 = vld [vmem:[%s3987_s12 + $0x354] ss:$28 sps:$4 sm:$0xff]  }
 0x4e2   :  { %2118 = vmatpush1.bf16.msra.mxu1 %v2898_v60  ;;  %v2985_v60 = vld [vmem:[%s3987_s12 + $0x350] ss:$28 sps:$4 sm:$0xff]  }
 0x4e3   :  { %2119 = vmatprep.subr.bf16.mxu1 %v2906_v61  ;;  %v2988_v61 = vld [vmem:[%s3987_s12 + $0x1d8] ss:$28 sps:$4 sm:$0xff]  }
 0x4e6   :  { %2120 = vmatpush1.bf16.msra.mxu1 %v2904_v62  ;;  %v2989_v62 = vld [vmem:[%s3987_s12 + $0x18] ss:$28 sps:$4 sm:$0xff]  }
 0x4e7   :  { %2121 = vmatprep.subr.bf16.mxu1 %v2912_v63  ;;  %v2990_v63 = vld [vmem:[%s3987_s12 + $0x210] ss:$28 sps:$4 sm:$0xff]  }
 0x4ea   :  { %2122 = vmatpush1.bf16.msra.mxu1 %v2910_v0  ;;  %v2991_v0 = vld [vmem:[%s3987_s12 + $0x50] ss:$28 sps:$4 sm:$0xff]  }
 0x4eb   :  { %2123 = vmatprep.subr.bf16.mxu1 %v2918_v1  ;;  %v2992_v1 = vld [vmem:[%s3987_s12 + $0x248] ss:$28 sps:$4 sm:$0xff]  }
 0x4ee   :  { %2124 = vmatpush1.bf16.msra.mxu1 %v2916_v2  ;;  %v2993_v2 = vld [vmem:[%s3987_s12 + $0x88] ss:$28 sps:$4 sm:$0xff]  }
 0x4ef   :  { %2125 = vmatprep.subr.bf16.mxu1 %v2924_v5  ;;  %v2994_v5 = vld [vmem:[%s3987_s12 + $0x280] ss:$28 sps:$4 sm:$0xff]  }
 0x4f2   :  { %2126 = vmatpush1.bf16.msra.mxu1 %v2922_v7  ;;  %v2995_v7 = vld [vmem:[%s3987_s12 + $0xc0] ss:$28 sps:$4 sm:$0xff]  }
 0x4f3   :  { %2127 = vmatprep.subr.bf16.mxu1 %v2930_v8  ;;  %v2996_v8 = vld [vmem:[%s3987_s12 + $0x2b8] ss:$28 sps:$4 sm:$0xff]  }
 0x4f6   :  { %2128 = vmatpush1.bf16.msra.mxu1 %v2928_v9  ;;  %v2997_v9 = vld [vmem:[%s3987_s12 + $0xf8] ss:$28 sps:$4 sm:$0xff]  }
 0x4f7   :  { %2129 = vmatprep.subr.bf16.mxu1 %v2936_v12  ;;  %v3000_v12 = vld [vmem:[%s3987_s12 + $0x328] ss:$28 sps:$4 sm:$0xff]  }
 0x4fa   :  { %2130 = vmatpush1.bf16.msra.mxu1 %v2934_v13  ;;  %v3001_v13 = vld [vmem:[%s3987_s12 + $0x168] ss:$28 sps:$4 sm:$0xff]   ;;  %s3034_s12 = smov [#allocation2]  }
 0x4fb   :  { %2140 = vmatprep.subr.bf16.mxu1 %v2942_v16  ;;  %v1506_v16 = vsub.s32 4, %v3481_v3  ;;  %s2275_s13 = sshll.u32 %s3034_s12, 4  ;;  %s2276_s13 = int_to_ptr.vmem [resolvable:$true] %s2275_s13 }
 0x4fc   :  { %s3006_s20 = scalar_lea.vmem %s2276_s13, 896  ;;  %p3011_p1 = scmp.lt.s32.totalorder %s2276_s13, %s2276_s13 }
 0x4fd   :  { %p3007_p0 = scmp.ne.s32.totalorder %s2276_s13, %s3006_s20  ;;  %p3012_p2 = scmp.lt.s32.totalorder %s3006_s20, %s3006_s20 }
 0x4ff   :  { %p3013_p3 = por %p3012_p2, %p3011_p1 }
 0x501   :  { %p3014_p4 = pnand %p3013_p3, %p3007_p0 }
 0x590   :  { %v1347_v20 = vpop.f32.mrb[12].mxu1 }
 0x591   :  { %v1348_v21 = vadd.f32 %v1347_v20, %v1226_v18  ;;  %v1349_v22 = vpop.f32.mrb[13].mxu1  ;;  %v1510_v18 = vsub.s32 5, %v3481_v3  ;;  %v1507_v20 = vrot.slane %v1484_v17, %v1506_v16 }
 0x592   :  { %v1350_v23 = vadd.f32 %v1349_v22, %v1230_v19  ;;  %v1351_v24 = vpop.f32.mrb[14].mxu1  ;;  %v1491_v19 = vrot.slane %v1484_v17, %v3484_v4  ;;  %v1498_v4 = vsub.s32 2, %v3481_v3 }
 0x593   :  { %v1354_v25 = vmax.f32 %v1348_v21, 0.0  ;;  %v1352_v26 = vpop.f32.mrb[15].mxu1  ;;  %v1495_v21 = vrot.slane %v1484_v17, %v3490_v6  ;;  %v1511_v22 = vrot.slane %v1484_v17, %v1510_v18  ;;  %v1502_v6 = vsub.s32 3, %v3481_v3 }
 0x594   :  { %v1355_v27 = vmax.f32 %v1350_v23, 0.0 }
 0x595   :  { %v3804_v30 = vpack.c.bf16 %v1354_v25, %v1354_v25 }
 0x596   :  { %v3799_v28 = vpack.c.bf16 %v1355_v27, %v1355_v27 }
 0x598   :  { %2131 = vmatprep.mubr.bf16.mxu1 %v3799_v28  ;;  %2213 = vmatprep.mubr.bf16.mxu0 %v3799_v28 }
 0x599   :  { %2132 = vmatmul.mubr.bf16.vlgmr.msra.gmra.mrb[16].mxu1 %v3804_v30  ;;  %2214 = vmatmul.mubr.bf16.vlgmr.msra.gmra.mrb[4].mxu0 %v3804_v30 }
 0x59a   :  { %2141 = vmatpush1.bf16.msra.mxu1 %v2940_v29  ;;  %2172 = vmatprep.mubr.bf16.mxu1 %v3799_v28 }
 0x59b   :  { %2142 = vmatprep.subr.bf16.mxu1 %v2945_v31 }
 0x59e   :  { %2143 = vmatpush1.bf16.msra.mxu1 %v2943_v32 }
 0x59f   :  { %2144 = vmatprep.subr.bf16.mxu1 %v2948_v33 }
 0x5a2   :  { %2145 = vmatpush1.bf16.msra.mxu1 %v2946_v34 }
 0x5a3   :  { %2146 = vmatprep.subr.bf16.mxu1 %v2951_v35  ;;  %v1499_v35 = vrot.slane %v1484_v17, %v1498_v4 }
 0x5a6   :  { %2147 = vmatpush1.bf16.msra.mxu1 %v2949_v36  ;;  %v1503_v36 = vrot.slane %v1484_v17, %v1502_v6 }
 0x5a7   :  { %2148 = vmatprep.subr.bf16.mxu1 %v2954_v37 }
 0x5aa   :  { %2149 = vmatpush1.bf16.msra.mxu1 %v2952_v38 }
 0x5ab   :  { %2150 = vmatprep.subr.bf16.mxu1 %v2957_v39 }
 0x5ae   :  { %2151 = vmatpush1.bf16.msra.mxu1 %v2955_v40 }
 0x5af   :  { %2152 = vmatprep.subr.bf16.mxu1 %v2960_v41 }
 0x5b2   :  { %2153 = vmatpush1.bf16.msra.mxu1 %v2958_v42 }
 0x5b3   :  { %2154 = vmatprep.subr.bf16.mxu1 %v2963_v43  ;;  %v1514_v43 = vsub.s32 6, %v3481_v3 }
 0x5b6   :  { %2155 = vmatpush1.bf16.msra.mxu1 %v2961_v44 }
 0x5b7   :  { %2156 = vmatprep.subr.bf16.mxu1 %v2966_v45  ;;  %v1515_v45 = vrot.slane %v1484_v17, %v1514_v43 }
 0x5ba   :  { %2157 = vmatpush1.bf16.msra.mxu1 %v2964_v46 }
 0x5bb   :  { %2158 = vmatprep.subr.bf16.mxu1 %v2969_v47 }
 0x5be   :  { %2159 = vmatpush1.bf16.msra.mxu1 %v2967_v48 }
 0x5bf   :  { %2160 = vmatprep.subr.bf16.mxu1 %v2972_v49 }
 0x5c2   :  { %2161 = vmatpush1.bf16.msra.mxu1 %v2970_v50 }
 0x5c3   :  { %2162 = vmatprep.subr.bf16.mxu1 %v2975_v51 }
 0x5c6   :  { %2163 = vmatpush1.bf16.msra.mxu1 %v2973_v52 }
 0x5c7   :  { %2164 = vmatprep.subr.bf16.mxu1 %v2978_v53 }
 0x5ca   :  { %2165 = vmatpush1.bf16.msra.mxu1 %v2976_v54 }
 0x5cb   :  { %2166 = vmatprep.subr.bf16.mxu1 %v2981_v55 }
 0x5ce   :  { %2167 = vmatpush1.bf16.msra.mxu1 %v2979_v56 }
 0x5cf   :  { %2168 = vmatprep.subr.bf16.mxu1 %v2984_v57 }
 0x5d2   :  { %2169 = vmatpush1.bf16.msra.mxu1 %v2982_v58 }
 0x5d3   :  { %2170 = vmatprep.subr.bf16.mxu1 %v2987_v59 }
 0x5d6   :  { %2171 = vmatpush1.bf16.msra.mxu1 %v2985_v60 }
 0x5d7   :  { %2578 = vmatprep.subr.bf16.mxu1 %v2988_v61 }
 0x5d9   :  { %2173 = vmatmul.mubr.bf16.vlgmr.msra.gmra.mrb[20].mxu1 %v3804_v30 }
 0x5da   :  { %2579 = vmatpush3.bf16.msra.mxu1 %v2989_v62  ;;  %2254 = vmatprep.mubr.bf16.mxu1 %v3799_v28 }
 0x5db   :  { %2580 = vmatprep.subr.bf16.mxu1 %v2990_v63 }
 0x5de   :  { %2581 = vmatpush3.bf16.msra.mxu1 %v2991_v0 }
 0x5df   :  { %2582 = vmatprep.subr.bf16.mxu1 %v2992_v1 }
 0x5e2   :  { %2583 = vmatpush3.bf16.msra.mxu1 %v2993_v2 }
 0x5e3   :  { %2584 = vmatprep.subr.bf16.mxu1 %v2994_v5 }
 0x5e6   :  { %2585 = vmatpush3.bf16.msra.mxu1 %v2995_v7 }
 0x5e7   :  { %2586 = vmatprep.subr.bf16.mxu1 %v2996_v8 }
 0x5ea   :  { %2587 = vmatpush3.bf16.msra.mxu1 %v2997_v9 }
 0x5eb   :  { %2588 = vmatprep.subr.bf16.mxu1 %v2998_v10 }
 0x5ee   :  { %2589 = vmatpush3.bf16.msra.mxu1 %v2999_v11 }
 0x5ef   :  { %2590 = vmatprep.subr.bf16.mxu1 %v3000_v12 }
 0x5f2   :  { %2591 = vmatpush3.bf16.msra.mxu1 %v3001_v13 }
 0x5f3   :  { %2592 = vmatprep.subr.bf16.mxu1 %v3002_v14 }
 0x5f6   :  { %2593 = vmatpush3.bf16.msra.mxu1 %v3003_v15 }
 0x5f9   :  { %2255 = vmatmul.mubr.bf16.vlgmr.msra.gmra.mrb[24].mxu1 %v3804_v30 }
 0x66c   :  { %v2133_v23 = vpop.f32.mrb[16].mxu1  ;;  %v2215_v24 = vpop.f32.mrb[4].mxu0 }
 0x66d   :  { %v2134_v25 = vadd.f32 %v2133_v23, %v1491_v19  ;;  %v2216_v26 = vadd.f32 %v2215_v24, %v1507_v20  ;;  %v2135_v27 = vpop.f32.mrb[17].mxu1  ;;  %v2217_v28 = vpop.f32.mrb[5].mxu0 }
 0x66e   :  { %v2136_v29 = vadd.f32 %v2135_v27, %v1495_v21  ;;  %v2218_v30 = vadd.f32 %v2217_v28, %v1511_v22  ;;  %v2137_v31 = vpop.f32.mrb[18].mxu1  ;;  %v2219_v32 = vpop.f32.mrb[6].mxu0 }
 0x66f   :  { %2262 = vst [vmem:[#allocation2] sm:$0xff] %v2134_v25  ;;  %2266 = vst [vmem:[#allocation2 + $0x20] sm:$0xff] %v2216_v26  ;;  %v2138_v33 = vpop.f32.mrb[19].mxu1  ;;  %v2220_v34 = vpop.f32.mrb[7].mxu0 }
 0x670   :  { %2263 = vst [vmem:[#allocation2 + $0x8] sm:$0xff] %v2136_v29  ;;  %2267 = vst [vmem:[#allocation2 + $0x28] sm:$0xff] %v2218_v30 }
 0x6ac   :  { %v2174_v37 = vpop.f32.mrb[20].mxu1 }
 0x6ad   :  { %v2175_v38 = vadd.f32 %v2174_v37, %v1499_v35  ;;  %v2176_v39 = vpop.f32.mrb[21].mxu1 }
 0x6ae   :  { %v2177_v40 = vadd.f32 %v2176_v39, %v1503_v36  ;;  %v2178_v41 = vpop.f32.mrb[22].mxu1 }
 0x6af   :  { %2264 = vst [vmem:[#allocation2 + $0x10] sm:$0xff] %v2175_v38  ;;  %v2179_v42 = vpop.f32.mrb[23].mxu1 }
 0x6b0   :  { %2265 = vst [vmem:[#allocation2 + $0x18] sm:$0xff] %v2177_v40 }
 0x6cc   :  { %v2594_v44 = vpop.f32.mrb[24].mxu1 }
 0x6cd   :  { %v2595_v46 = vpop.f32.mrb[25].mxu1 }
 0x6ce   :  { %v2596_v47 = vadd.f32 %v2595_v46, %v2594_v44  ;;  %v2597_v48 = vpop.f32.mrb[26].mxu1 }
 0x6cf   :  { %v2598_v49 = vpop.f32.mrb[27].mxu1 }
 0x6d0   :  { %v2257_v50 = vadd.f32 %v2596_v47, %v1515_v45 }
 0x6d2   :  { %2268 = vst.msk [vmem:[#allocation2 + $0x30] sm:$0xff] %vm665_vm0, %v2257_v50 }
 0x6d3   :  { %3017 = shalt.err (!%p3014_p4)
}
 0x6d4   :  { %s3018_s7 = scalar_lea.hbm %s3989_s14, 896 }
 0x6d5   :  { %p3019_p5 = scmp.ne.s32.totalorder %s3989_s14, %s3018_s7  ;;  %p3022_p6 = scmp.lt.u32.totalorder %s3018_s7, %s3989_s14 }
 0x6d7   :  { %p3024_p7 = pnand %p3022_p6, %p3019_p5 }
 0x6d9   :  { %3027 = shalt.err (!%p3024_p7)
}
 0x6da   :  { %2278 = dma.vmem_to_hbm [thread:$0]  %s2276_s13, 896, %s3989_s14, [#allocation3]  }
 0x6db   :  { %3028 = dma.done.wait [#allocation3], 896  }
 0x6dc   :  { %3029 = vsyncadd [#allocation3], 4294966400 }
 0x6dd   :  { %2286 = vsyncpa [#allocation3], 1 }

</bundles_post_ra>
